<compile_context>
chip_gen: v5e
topology: v5e:2x2
jax: 0.10.0
libtpu: 0.0.40
codegen_flags: <defaults>
</compile_context>

<pallas_src>
import functools
import math

import jax
import jax.numpy as jnp
from jax import lax
from jax.experimental import pallas as pl
from jax.experimental.pallas import tpu as pltpu


def _round_up(x, m):
    return ((x + m - 1) // m) * m


def _flash_attention_kernel(q_ref, k_ref, v_ref, mask_ref, o_ref,
                            m_scr, l_scr, acc_scr, *, sm_scale):
    """One (batch, head-block, q-tile) x (kv-tile) step of online-softmax attention."""
    kv_idx = pl.program_id(3)

    @pl.when(kv_idx == 0)
    def _init():
        m_scr[...] = jnp.full_like(m_scr, -jnp.inf)
        l_scr[...] = jnp.zeros_like(l_scr)
        acc_scr[...] = jnp.zeros_like(acc_scr)

    q = q_ref[0]                 # (hb, tq, D)
    k = k_ref[0]                 # (hb, tk, D)
    v = v_ref[0]                 # (hb, tk, D)
    mask = mask_ref[0, 0]        # (rm, tk) f32, rm in {1, tq}; broadcast over heads

    # Hoist 1/sqrt(d) onto Q: tq*D multiplies per step instead of tq*tk.
    q = q * jnp.array(sm_scale, dtype=q.dtype)

    # scores = Q @ K^T, contracting the last dim of both operands (no .T / XLU
    # transpose), batched over the head block; f32 accumulation on the MXU.
    scores = lax.dot_general(
        q, k,
        dimension_numbers=(((2,), (2,)), ((0,), (0,))),
        preferred_element_type=jnp.float32)              # (hb, tq, tk)
    scores = scores + mask                               # additive mask (broadcast)

    # Online (streaming) softmax update.
    m_prev = m_scr[...]                                  # (hb, tq, 1)
    m_new = jnp.maximum(m_prev, jnp.max(scores, axis=-1, keepdims=True))
    alpha = jnp.exp(m_prev - m_new)
    p = jnp.exp(scores - m_new)                          # (hb, tq, tk)
    l_scr[...] = alpha * l_scr[...] + jnp.sum(p, axis=-1, keepdims=True)

    pv = lax.dot_general(
        p.astype(v.dtype), v,
        dimension_numbers=(((2,), (1,)), ((0,), (0,))),
        preferred_element_type=jnp.float32)              # (hb, tq, D)
    acc_scr[...] = alpha * acc_scr[...] + pv
    m_scr[...] = m_new

    @pl.when(kv_idx == pl.num_programs(3) - 1)
    def _finalize():
        inv_l = pl.reciprocal(l_scr[...], approx=True)   # EUP vrcp (free slot)
        o_ref[0] = (acc_scr[...] * inv_l).astype(o_ref.dtype)


def base_attention_product(query_layer, key_layer, value_layer, attention_mask=None,
                           *, block_q=128, block_k=512, matmul_dtype=None):
    """softmax(Q K^T / sqrt(d) + mask) @ V via a flash-style Pallas TPU kernel.

    query_layer / key_layer / value_layer: [B, H, S, D]
    attention_mask: additive mask, [B or 1, 1, Sq or 1, Sk] (or None).
    matmul_dtype: e.g. jnp.bfloat16 to run MXU operands in bf16 (f32 accumulation).
    block_q / block_k: sequence tile sizes; use multiples of 128 on v5e and larger
      128-multiples (e.g. 256/512) on v6e/v7x.
    """
    orig_dtype = query_layer.dtype
    B, H, Sq, D = query_layer.shape
    Sk = key_layer.shape[2]
    sm_scale = 1.0 / math.sqrt(D)

    if matmul_dtype is not None:
        query_layer = query_layer.astype(matmul_dtype)
        key_layer = key_layer.astype(matmul_dtype)
        value_layer = value_layer.astype(matmul_dtype)

    # ---- tile sizes (block dims must be (8,128)-friendly or full extent) ----
    if Sq > block_q:
        tq, sq_pad = block_q, _round_up(Sq, block_q)
    else:
        tq, sq_pad = Sq, Sq
    if Sk > block_k:
        tk, sk_pad = block_k, _round_up(Sk, block_k)
    else:
        tk, sk_pad = Sk, Sk

    # Heads per grid step: fold heads when D < 128 so each step carries more
    # MXU work and larger DMA tiles.  (Output layout stays [B, H, Sq, D].)
    if D >= 128:
        hb = 1
    else:
        target = max(1, 128 // D)
        hb = 1
        for cand in range(min(H, target), 0, -1):
            if H % cand == 0:
                hb = cand
                break

    # ---- pad sequences if the tiles do not divide them ----
    if sq_pad != Sq:
        query_layer = jnp.pad(query_layer, ((0, 0), (0, 0), (0, sq_pad - Sq), (0, 0)))
    if sk_pad != Sk:
        key_layer = jnp.pad(key_layer, ((0, 0), (0, 0), (0, sk_pad - Sk), (0, 0)))
        value_layer = jnp.pad(value_layer, ((0, 0), (0, 0), (0, sk_pad - Sk), (0, 0)))

    # ---- additive mask, kept as small as possible ----
    if attention_mask is None:
        # Only a single (1,1,1,Sk_pad) key-bias row; padded keys get -1e9.
        key_bias = jnp.where(jnp.arange(sk_pad) < Sk, 0.0, -1e9).astype(jnp.float32)
        mask = key_bias[None, None, None, :]
    else:
        mask = attention_mask.astype(jnp.float32)
        while mask.ndim < 4:
            mask = mask[None]
        if mask.shape[1] != 1:
            raise ValueError("attention_mask must broadcast over heads (dim 1 == 1)")
        if mask.shape[0] not in (1, B):
            raise ValueError("attention_mask batch dim must be 1 or B")
        if mask.shape[2] not in (1, Sq):
            raise ValueError("attention_mask dim -2 must be 1 or Sq")
        if sk_pad != Sk:
            mask = jnp.pad(mask, ((0, 0), (0, 0), (0, 0), (0, sk_pad - Sk)),
                           constant_values=-1e9)
        if mask.shape[2] != 1 and sq_pad != Sq:
            mask = jnp.pad(mask, ((0, 0), (0, 0), (0, sq_pad - Sq), (0, 0)))

    mask_batched = mask.shape[0] != 1
    mask_q_tiled = mask.shape[2] != 1
    rm = tq if mask_q_tiled else 1

    grid = (B, H // hb, sq_pad // tq, sk_pad // tk)

    q_spec = pl.BlockSpec((1, hb, tq, D), lambda b, h, qi, ki: (b, h, qi, 0))
    k_spec = pl.BlockSpec((1, hb, tk, D), lambda b, h, qi, ki: (b, h, ki, 0))
    v_spec = pl.BlockSpec((1, hb, tk, D), lambda b, h, qi, ki: (b, h, ki, 0))

    def mask_index_map(b, h, qi, ki):
        return (b if mask_batched else 0, 0, qi if mask_q_tiled else 0, ki)

    m_spec = pl.BlockSpec((1, 1, rm, tk), mask_index_map)
    o_spec = pl.BlockSpec((1, hb, tq, D), lambda b, h, qi, ki: (b, h, qi, 0))

    kernel = functools.partial(_flash_attention_kernel, sm_scale=sm_scale)

    out = pl.pallas_call(
        kernel,
        out_shape=jax.ShapeDtypeStruct((B, H, sq_pad, D), orig_dtype),
        grid_spec=pltpu.PrefetchScalarGridSpec(
            num_scalar_prefetch=0,
            grid=grid,
            in_specs=[q_spec, k_spec, v_spec, m_spec],
            out_specs=o_spec,
            scratch_shapes=[
                pltpu.VMEM((hb, tq, 1), jnp.float32),   # running max
                pltpu.VMEM((hb, tq, 1), jnp.float32),   # running denom
                pltpu.VMEM((hb, tq, D), jnp.float32),   # running output accumulator
            ],
        ),
        compiler_params=pltpu.CompilerParams(
            dimension_semantics=("parallel", "parallel", "parallel", "arbitrary"),
        ),
    )(query_layer, key_layer, value_layer, mask)

    if sq_pad != Sq:
        out = out[:, :, :Sq, :]
    return out


def _reference(query_layer, key_layer, value_layer, attention_mask):
    d = query_layer.shape[-1]
    scores = jnp.einsum("bhqd,bhkd->bhqk", query_layer, key_layer) / math.sqrt(d)
    scores = scores + attention_mask
    probs = jax.nn.softmax(scores, axis=-1)
    return jnp.einsum("bhqk,bhkd->bhqd", probs, value_layer)


if __name__ == "__main__":
    # Small shapes consistent with the module's forward:
    # batch=2, heads=4, seq=8, head_dim=32.
    B, H, S, D = 2, 4, 8, 32

    key = jax.random.PRNGKey(0)
    kq, kk, kv, km = jax.random.split(key, 4)

    q = jax.random.normal(kq, (B, H, S, D), dtype=jnp.float32)
    k = jax.random.normal(kk, (B, H, S, D), dtype=jnp.float32)
    v = jax.random.normal(kv, (B, H, S, D), dtype=jnp.float32)

    # Natural [B,1,1,Sk] additive key mask: 0 for visible keys, -10000 masked.
    keep = (jax.random.uniform(km, (B, 1, 1, S)) > 0.2).astype(jnp.float32)
    mask = (1.0 - keep) * -10000.0

    out = jax.block_until_ready(base_attention_product(q, k, v, mask))
    ref = _reference(q, k, v, mask)
    assert out.shape == (B, H, S, D), out.shape
    # Tolerance accounts for the approximate (EUP) reciprocal in the softmax denom.
    assert jnp.allclose(out, ref, atol=1e-2, rtol=1e-2), float(jnp.max(jnp.abs(out - ref)))

    # None-mask path: no full [B,1,Sq,Sk] zero tensor is ever materialized.
    out_nm = jax.block_until_ready(base_attention_product(q, k, v, None))
    ref_nm = _reference(q, k, v, jnp.zeros((B, 1, 1, S), jnp.float32))
    assert jnp.allclose(out_nm, ref_nm, atol=1e-2, rtol=1e-2), \
        float(jnp.max(jnp.abs(out_nm - ref_nm)))

    # bf16 MXU-operand path (f32 accumulation) for v6e/v7x.
    out_bf16 = jax.block_until_ready(
        base_attention_product(q, k, v, mask, matmul_dtype=jnp.bfloat16))
    assert out_bf16.shape == (B, H, S, D)
    assert bool(jnp.all(jnp.isfinite(out_bf16)))
    assert jnp.allclose(out_bf16.astype(jnp.float32), ref, atol=1e-1, rtol=0.0), \
        float(jnp.max(jnp.abs(out_bf16.astype(jnp.float32) - ref)))

    print("KERNEL_OK")
</pallas_src>

<mosaic_0001>
module attributes {stable_mosaic.version = 11 : i64} {
  func.func @_flash_attention_kernel(%arg0: i32, %arg1: i32, %arg2: i32, %arg3: i32, %arg4: memref<1x4x8x32xf32, #tpu.memory_space<vmem>>, %arg5: memref<1x4x8x32xf32, #tpu.memory_space<vmem>>, %arg6: memref<1x4x8x32xf32, #tpu.memory_space<vmem>>, %arg7: memref<1x1x1x8xf32, #tpu.memory_space<vmem>>, %arg8: memref<1x4x8x32xf32, #tpu.memory_space<vmem>>, %arg9: memref<4x8x1xf32, #tpu.memory_space<vmem>>, %arg10: memref<4x8x1xf32, #tpu.memory_space<vmem>>, %arg11: memref<4x8x32xf32, #tpu.memory_space<vmem>>) attributes {dimension_semantics = [#tpu.dimension_semantics<parallel>, #tpu.dimension_semantics<parallel>, #tpu.dimension_semantics<parallel>, #tpu.dimension_semantics<arbitrary>], iteration_bounds = array<i64: 2, 1, 1, 1>, scalar_prefetch = 0 : i64, scratch_operands = 3 : i64, tpu.core_type = #tpu.core_type<tc>, window_params = [{transform_indices = @transform_0, window_bounds = array<i64: 1, 4, 8, 32>}, {transform_indices = @transform_1, window_bounds = array<i64: 1, 4, 8, 32>}, {transform_indices = @transform_2, window_bounds = array<i64: 1, 4, 8, 32>}, {transform_indices = @transform_3, window_bounds = array<i64: 1, 1, 1, 8>}, {transform_indices = @transform_4, window_bounds = array<i64: 1, 4, 8, 32>}]} {
    %c0_i32 = arith.constant 0 : i32
    %0 = arith.cmpi eq, %arg3, %c0_i32 : i32
    %1 = arith.extui %0 : i1 to i32
    %c0_i32_0 = arith.constant 0 : i32
    %2 = arith.cmpi ne, %1, %c0_i32_0 : i32
    scf.if %2 {
      %cst_40 = arith.constant 0xFF800000 : f32
      %42 = vector.broadcast %cst_40 : f32 to vector<4x8x1xf32>
      %c0_41 = arith.constant 0 : index
      %c0_42 = arith.constant 0 : index
      %c0_43 = arith.constant 0 : index
      %43 = vector.load %arg9[%c0_41, %c0_42, %c0_43] : memref<4x8x1xf32, #tpu.memory_space<vmem>>, vector<4x8x1xf32>
      tpu.vector_store %arg9[%c0_41, %c0_42, %c0_43], %42 {strides = array<i32>} : memref<4x8x1xf32, #tpu.memory_space<vmem>>, vector<4x8x1xf32>,
      %cst_44 = arith.constant 0.000000e+00 : f32
      %44 = vector.broadcast %cst_44 : f32 to vector<4x8x1xf32>
      %c0_45 = arith.constant 0 : index
      %c0_46 = arith.constant 0 : index
      %c0_47 = arith.constant 0 : index
      %45 = vector.load %arg10[%c0_45, %c0_46, %c0_47] : memref<4x8x1xf32, #tpu.memory_space<vmem>>, vector<4x8x1xf32>
      tpu.vector_store %arg10[%c0_45, %c0_46, %c0_47], %44 {strides = array<i32>} : memref<4x8x1xf32, #tpu.memory_space<vmem>>, vector<4x8x1xf32>,
      %cst_48 = arith.constant 0.000000e+00 : f32
      %46 = vector.broadcast %cst_48 : f32 to vector<4x8x32xf32>
      %c0_49 = arith.constant 0 : index
      %c0_50 = arith.constant 0 : index
      %c0_51 = arith.constant 0 : index
      %47 = vector.load %arg11[%c0_49, %c0_50, %c0_51] : memref<4x8x32xf32, #tpu.memory_space<vmem>>, vector<4x8x32xf32>
      tpu.vector_store %arg11[%c0_49, %c0_50, %c0_51], %46 {strides = array<i32>} : memref<4x8x32xf32, #tpu.memory_space<vmem>>, vector<4x8x32xf32>,
    } else {
    }
    %c0 = arith.constant 0 : index
    %c0_1 = arith.constant 0 : index
    %c0_2 = arith.constant 0 : index
    %c0_3 = arith.constant 0 : index
    %3 = vector.load %arg4[%c0, %c0_1, %c0_2, %c0_3] : memref<1x4x8x32xf32, #tpu.memory_space<vmem>>, vector<1x4x8x32xf32>
    %4 = vector.shape_cast %3 : vector<1x4x8x32xf32> to vector<4x8x32xf32>
    %c0_4 = arith.constant 0 : index
    %c0_5 = arith.constant 0 : index
    %c0_6 = arith.constant 0 : index
    %c0_7 = arith.constant 0 : index
    %5 = vector.load %arg5[%c0_4, %c0_5, %c0_6, %c0_7] : memref<1x4x8x32xf32, #tpu.memory_space<vmem>>, vector<1x4x8x32xf32>
    %6 = vector.shape_cast %5 : vector<1x4x8x32xf32> to vector<4x8x32xf32>
    %c0_8 = arith.constant 0 : index
    %c0_9 = arith.constant 0 : index
    %c0_10 = arith.constant 0 : index
    %c0_11 = arith.constant 0 : index
    %7 = vector.load %arg6[%c0_8, %c0_9, %c0_10, %c0_11] : memref<1x4x8x32xf32, #tpu.memory_space<vmem>>, vector<1x4x8x32xf32>
    %8 = vector.shape_cast %7 : vector<1x4x8x32xf32> to vector<4x8x32xf32>
    %c0_12 = arith.constant 0 : index
    %c0_13 = arith.constant 0 : index
    %c0_14 = arith.constant 0 : index
    %c0_15 = arith.constant 0 : index
    %9 = vector.load %arg7[%c0_12, %c0_13, %c0_14, %c0_15] : memref<1x1x1x8xf32, #tpu.memory_space<vmem>>, vector<1x1x1x8xf32>
    %10 = vector.shape_cast %9 : vector<1x1x1x8xf32> to vector<1x8xf32>
    %cst = arith.constant 0.176776692 : f32
    %11 = vector.broadcast %cst : f32 to vector<4x8x32xf32>
    %12 = arith.mulf %4, %11 : vector<4x8x32xf32>
    %cst_16 = arith.constant dense<0.000000e+00> : vector<4x8x8xf32>
    %13 = tpu.matmul %12, %6, %cst_16 {dimension_numbers = #tpu.dot_dimension_numbers<[2], [2], [1], [1], [0, 0, 0, 1, 1, 1], [0], [0]>} : vector<4x8x32xf32>, vector<4x8x32xf32>, vector<4x8x8xf32> -> vector<4x8x8xf32>
    %14 = vector.shape_cast %10 : vector<1x8xf32> to vector<1x1x8xf32>
    %15 = vector.broadcast %14 : vector<1x1x8xf32> to vector<4x8x8xf32>
    %16 = arith.addf %13, %15 : vector<4x8x8xf32>
    %c0_17 = arith.constant 0 : index
    %c0_18 = arith.constant 0 : index
    %c0_19 = arith.constant 0 : index
    %17 = vector.load %arg9[%c0_17, %c0_18, %c0_19] : memref<4x8x1xf32, #tpu.memory_space<vmem>>, vector<4x8x1xf32>
    %cst_20 = arith.constant dense<0xFF800000> : vector<4x8xf32>
    %18 = vector.multi_reduction <maximumf>, %16, %cst_20 [2] : vector<4x8x8xf32> to vector<4x8xf32>
    %19 = vector.shape_cast %18 : vector<4x8xf32> to vector<4x8x1xf32>
    %20 = arith.maximumf %17, %19 : vector<4x8x1xf32>
    %21 = arith.subf %17, %20 : vector<4x8x1xf32>
    %22 = math.exp %21 : vector<4x8x1xf32>
    %23 = vector.broadcast %20 : vector<4x8x1xf32> to vector<4x8x8xf32>
    %24 = arith.subf %16, %23 : vector<4x8x8xf32>
    %25 = math.exp %24 : vector<4x8x8xf32>
    %c0_21 = arith.constant 0 : index
    %c0_22 = arith.constant 0 : index
    %c0_23 = arith.constant 0 : index
    %26 = vector.load %arg10[%c0_21, %c0_22, %c0_23] : memref<4x8x1xf32, #tpu.memory_space<vmem>>, vector<4x8x1xf32>
    %27 = arith.mulf %22, %26 : vector<4x8x1xf32>
    %cst_24 = arith.constant dense<0.000000e+00> : vector<4x8xf32>
    %28 = vector.multi_reduction <add>, %25, %cst_24 [2] : vector<4x8x8xf32> to vector<4x8xf32>
    %29 = vector.shape_cast %28 : vector<4x8xf32> to vector<4x8x1xf32>
    %30 = arith.addf %27, %29 : vector<4x8x1xf32>
    %c0_25 = arith.constant 0 : index
    %c0_26 = arith.constant 0 : index
    %c0_27 = arith.constant 0 : index
    %31 = vector.load %arg10[%c0_25, %c0_26, %c0_27] : memref<4x8x1xf32, #tpu.memory_space<vmem>>, vector<4x8x1xf32>
    tpu.vector_store %arg10[%c0_25, %c0_26, %c0_27], %30 {strides = array<i32>} : memref<4x8x1xf32, #tpu.memory_space<vmem>>, vector<4x8x1xf32>,
    %cst_28 = arith.constant dense<0.000000e+00> : vector<4x8x32xf32>
    %32 = tpu.matmul %25, %8, %cst_28 {dimension_numbers = #tpu.dot_dimension_numbers<[2], [1], [1], [2], [0, 0, 0, 1, 1, 2], [0], [0]>} : vector<4x8x8xf32>, vector<4x8x32xf32>, vector<4x8x32xf32> -> vector<4x8x32xf32>
    %c0_29 = arith.constant 0 : index
    %c0_30 = arith.constant 0 : index
    %c0_31 = arith.constant 0 : index
    %33 = vector.load %arg11[%c0_29, %c0_30, %c0_31] : memref<4x8x32xf32, #tpu.memory_space<vmem>>, vector<4x8x32xf32>
    %34 = vector.broadcast %22 : vector<4x8x1xf32> to vector<4x8x32xf32>
    %35 = arith.mulf %34, %33 : vector<4x8x32xf32>
    %36 = arith.addf %35, %32 : vector<4x8x32xf32>
    %c0_32 = arith.constant 0 : index
    %c0_33 = arith.constant 0 : index
    %c0_34 = arith.constant 0 : index
    %37 = vector.load %arg11[%c0_32, %c0_33, %c0_34] : memref<4x8x32xf32, #tpu.memory_space<vmem>>, vector<4x8x32xf32>
    tpu.vector_store %arg11[%c0_32, %c0_33, %c0_34], %36 {strides = array<i32>} : memref<4x8x32xf32, #tpu.memory_space<vmem>>, vector<4x8x32xf32>,
    %c0_35 = arith.constant 0 : index
    %c0_36 = arith.constant 0 : index
    %c0_37 = arith.constant 0 : index
    %38 = vector.load %arg9[%c0_35, %c0_36, %c0_37] : memref<4x8x1xf32, #tpu.memory_space<vmem>>, vector<4x8x1xf32>
    tpu.vector_store %arg9[%c0_35, %c0_36, %c0_37], %20 {strides = array<i32>} : memref<4x8x1xf32, #tpu.memory_space<vmem>>, vector<4x8x1xf32>,
    %c0_i32_38 = arith.constant 0 : i32
    %39 = arith.cmpi eq, %arg3, %c0_i32_38 : i32
    %40 = arith.extui %39 : i1 to i32
    %c0_i32_39 = arith.constant 0 : i32
    %41 = arith.cmpi ne, %40, %c0_i32_39 : i32
    scf.if %41 {
      %c0_40 = arith.constant 0 : index
      %c0_41 = arith.constant 0 : index
      %c0_42 = arith.constant 0 : index
      %42 = vector.load %arg10[%c0_40, %c0_41, %c0_42] : memref<4x8x1xf32, #tpu.memory_space<vmem>>, vector<4x8x1xf32>
      %43 = tpu.reciprocal %42 {approx = true} : vector<4x8x1xf32> -> vector<4x8x1xf32>
      %c0_43 = arith.constant 0 : index
      %c0_44 = arith.constant 0 : index
      %c0_45 = arith.constant 0 : index
      %44 = vector.load %arg11[%c0_43, %c0_44, %c0_45] : memref<4x8x32xf32, #tpu.memory_space<vmem>>, vector<4x8x32xf32>
      %45 = vector.broadcast %43 : vector<4x8x1xf32> to vector<4x8x32xf32>
      %46 = arith.mulf %44, %45 : vector<4x8x32xf32>
      %c0_46 = arith.constant 0 : index
      %c0_47 = arith.constant 0 : index
      %c0_48 = arith.constant 0 : index
      %c0_49 = arith.constant 0 : index
      %47 = vector.load %arg8[%c0_46, %c0_47, %c0_48, %c0_49] : memref<1x4x8x32xf32, #tpu.memory_space<vmem>>, vector<1x4x8x32xf32>
      %48 = vector.shape_cast %47 : vector<1x4x8x32xf32> to vector<4x8x32xf32>
      %49 = vector.shape_cast %46 : vector<4x8x32xf32> to vector<1x4x8x32xf32>
      tpu.vector_store %arg8[%c0_46, %c0_47, %c0_48, %c0_49], %49 {strides = array<i32>} : memref<1x4x8x32xf32, #tpu.memory_space<vmem>>, vector<1x4x8x32xf32>,
    } else {
    }
    return
  }
  func.func @transform_0(%arg0: i32, %arg1: i32, %arg2: i32, %arg3: i32) -> (i32, i32, i32, i32) {
    %c0_i32 = arith.constant 0 : i32
    %c0_i32_0 = arith.constant 0 : i32
    return %arg0, %arg1, %arg2, %c0_i32 : i32, i32, i32, i32
  }
  func.func @transform_1(%arg0: i32, %arg1: i32, %arg2: i32, %arg3: i32) -> (i32, i32, i32, i32) {
    %c0_i32 = arith.constant 0 : i32
    %c0_i32_0 = arith.constant 0 : i32
    return %arg0, %arg1, %arg3, %c0_i32 : i32, i32, i32, i32
  }
  func.func @transform_2(%arg0: i32, %arg1: i32, %arg2: i32, %arg3: i32) -> (i32, i32, i32, i32) {
    %c0_i32 = arith.constant 0 : i32
    %c0_i32_0 = arith.constant 0 : i32
    return %arg0, %arg1, %arg3, %c0_i32 : i32, i32, i32, i32
  }
  func.func @transform_3(%arg0: i32, %arg1: i32, %arg2: i32, %arg3: i32) -> (i32, i32, i32, i32) {
    %c0_i32 = arith.constant 0 : i32
    %c0_i32_0 = arith.constant 0 : i32
    %c0_i32_1 = arith.constant 0 : i32
    return %arg0, %c0_i32, %c0_i32_0, %arg3 : i32, i32, i32, i32
  }
  func.func @transform_4(%arg0: i32, %arg1: i32, %arg2: i32, %arg3: i32) -> (i32, i32, i32, i32) {
    %c0_i32 = arith.constant 0 : i32
    %c0_i32_0 = arith.constant 0 : i32
    return %arg0, %arg1, %arg2, %c0_i32 : i32, i32, i32, i32
  }
}

</mosaic_0001>

<bundles_post_ra>
// kernel: tpu_custom_call.1
= control target key start
LH: loop header
LB: loop body
LE: loop exit
PB: predicated region body
PF: predicated region fallthrough
CT: control target
= control target key end

     0   :  { %s1555_s0 = inlined_call_operand.hbm [shape: f32[2,4,8,32], index: 0, kind: input, shape index: {}]   ;;  %s1556_s1 = inlined_call_operand.hbm [shape: f32[2,4,8,32], index: 1, kind: input, shape index: {}]   ;;  %s1557_s2 = inlined_call_operand.hbm [shape: f32[2,4,8,32], index: 2, kind: input, shape index: {}]   ;;  %s1558_s3 = inlined_call_operand.vmem [shape: f32[2,1,1,8], index: 3, kind: input, shape index: {}]   ;;  %s1559_s4 = inlined_call_operand.hbm [shape: f32[2,4,8,32], index: 4, kind: output, shape index: {}]  }
   0x1   :  { %1566 = sst [smem:[#allocation21_spill]] %s1556_s1 }
   0x2   :  { %9 = vsyncpa [#allocation6], 0 }
   0x3   :  { %11 = vsyncpa [#allocation6 + $0x1], 0 }
   0x4   :  { %12 = vsyncpa [#allocation9], 0 }
   0x5   :  { %14 = vsyncpa [#allocation9 + $0x1], 0 }
   0x6   :  { %15 = vsyncpa [#allocation7], 0 }
   0x7   :  { %17 = vsyncpa [#allocation7 + $0x1], 0  ;;  %s1324_s15 = smov 0   ;;  %s1326_s16 = smov 0  }
   0x8   :  { %s1328_s17 = smov 0   ;;  %s1330_s18 = smov 0  }
   0x9   :  { %s1332_s19 = smov 0   ;;  %s1334_s20 = smov 0  }
   0xa LB: > { %1567 = sst [smem:[#allocation15_spill]] %s1278_s17  ;;  %s1355_s21 = sadd.s32 4294967295, %s1290_s20   ;;  %s1290_s20 = sphi %s1334_s20, %s23_s20   ;;  %s1286_s19 = sphi %s1332_s19, %s1585_s19   ;;  %s1282_s18 = sphi %s1330_s18, %s1584_s18   ;;  %s1278_s17 = sphi %s1328_s17, %s1583_s17   ;;  %s1274_s16 = sphi %s1326_s16, %s1587_s16   ;;  %s1270_s15 = sphi %s1324_s15, %s1586_s15  }
   0xb   : > { %1568 = sst [smem:[#allocation16_spill]] %s1286_s19  ;;  %s969_s22 = sadd.s32 4294967294, %s1290_s20  }
   0xc   : > { %1569 = sst [smem:[#allocation17_spill]] %s1290_s20  ;;  %s49_s23 = sadd.s32 1, %s1286_s19 }
   0xd   : > { %s60_s24 = sadd.s32 1, %s1278_s17  ;;  %p51_p0 = scmp.ge.s32.totalorder %s49_s23, 2 }
   0xe   : > { %p67_p1 = scmp.ne.s32.totalorder %s1278_s17, %s1274_s16  ;;  %p68_p2 = scmp.eq.s32.totalorder %s1290_s20, 0 }
   0xf   : > { %p73_p3 = scmp.ne.s32.totalorder %s1274_s16, %s1270_s15  ;;  %s1589_s23 = smov (%p51_p0, %s49_s23), 0 }
  0x10   : > { %1570 = sst [smem:[#allocation18_spill]] %s1589_s23  ;;  %p1367_p4 = por %p68_p2, %p67_p1 }
  0x11   : > { %p74_p5 = scmp.eq.s32.totalorder %s1355_s21, 0  ;;  %s53_s26 = ssub.s32 %s1286_s19, %s1589_s23 }
  0x12   : > { %p189_p6 = scmp.eq.s32.totalorder %s1355_s21, 1  ;;  %p58_p7 = scmp.eq.s32.totalorder %s53_s26, 0 }
  0x13   : > { %p1375_p8 = por %p74_p5, %p73_p3  ;;  %p195_p10 = scmp.eq.s32.totalorder %s969_s22, 1 }
  0x14   : > { %p1379_p9 = por %p189_p6, %p67_p1  ;;  %p971_p12 = scmp.ge.s32.totalorder %s1290_s20, 2 }
  0x15   : > { %s1384_s29 = scalar_select %p58_p7, %s1278_s17, %s60_s24  }
  0x16   : > { %p1386_p11 = por %p195_p10, %p73_p3  ;;  %p1029_p13 = scmp.lt.s32.totalorder %s1290_s20, 2 }
  0x17   : > { %1574 = sst [smem:[#allocation19_spill]] %s1384_s29  ;;  %s215_s5 = sand.u32 1, %s1278_s17  }
  0x18   : > { %s1575_s30 = scalar_select %p1386_p11, 1, 0 }
  0x19   : > { %s1393_s6 = sshll.u32 %s215_s5, 5  ;;  %s1003_s7 = sshll.u32 %s1286_s19, 5 }
  0x1a   : > { %1576 = sst [smem:[#allocation20_spill]] %s1575_s30  ;;  %p1398_p0 = pnand %p1029_p13, %p1367_p4 }
  0x1b   : > { %s240_s9 = sand.u32 1, %s1290_s20   ;;  %s1578_s1 = sld [smem:[#allocation21_spill]] }
  0x1c   : > { %s244_s14 = scalar_lea.vmem [#allocation8], %s1393_s6  ;;  %s241_s24 = scalar_lea.sflag [#allocation9], %s240_s9 }
  0x1d   : > { %s255_s22 = sshll.u32 %s244_s14, 4  ;;  %s1292_s26 = smov 128   ;;  %s256_s22 = int_to_ptr.vmem [resolvable:$true] %s255_s22 }
  0x1e   : > { %s1293_s25 = smov 8   ;;  %p981_p1 = scmp.ge.s32.totalorder %s1290_s20, 1 }
  0x1f   : > { %p297_p2 = scmp.lt.s32.totalorder %s1290_s20, 3  ;;  %s216_s9 = scalar_lea.sflag [#allocation6], %s215_s5 }
  0x20   : > { %s277_s29 = scalar_lea.hbm %s1557_s2, %s1003_s7  ;;  %s269_s20 = scalar_lea.vmem [#allocation10], %s1393_s6 }
  0x21   : > { %s252_s12 = scalar_lea.hbm %s1578_s1, %s1003_s7  ;;  %p1411_p3 = pnand %p981_p1, %p297_p2 }
  0x22   : > { %s253_s13 = sshll.u32 %s252_s12, 4  ;;  %s227_s12 = scalar_lea.hbm %s1555_s0, %s1003_s7  ;;  %s254_s13 = int_to_ptr.hbm [resolvable:$true] %s253_s13 }
  0x23   : > { %1021 = dma.hbm_to_vmem [thread:$0]  (!%p1398_p0), %s254_s13, 512, %s256_s22, %s241_s24, %s1292_s26, %s1292_s26, %s1293_s25  }
  0x24   : > { %s228_s14 = sshll.u32 %s227_s12, 4  ;;  %s219_s1 = scalar_lea.vmem [#allocation5], %s1393_s6  ;;  %s229_s14 = int_to_ptr.hbm [resolvable:$true] %s228_s14 }
  0x25   : > { %s230_s19 = sshll.u32 %s219_s1, 4  ;;  %s278_s17 = sshll.u32 %s277_s29, 4  ;;  %s231_s19 = int_to_ptr.vmem [resolvable:$true] %s230_s19  ;;  %s279_s17 = int_to_ptr.hbm [resolvable:$true] %s278_s17 }
  0x26   : > { %1018 = dma.hbm_to_vmem [thread:$0]  (!%p1398_p0), %s229_s14, 512, %s231_s19, %s216_s9, %s1292_s26, %s1292_s26, %s1293_s25  }
  0x27   : > { %s280_s30 = sshll.u32 %s269_s20, 4  ;;  %301 = sbr.rel (%p1411_p3) target bundleno = 729 (0x2d9), region = 36  ;;  %s281_s30 = int_to_ptr.vmem [resolvable:$true] %s280_s30 }
  0x28   : > { %1024 = dma.hbm_to_vmem [thread:$0]  (!%p1398_p0), %s279_s17, 512, %s281_s30, %s241_s24, %s1292_s26, %s1292_s26, %s1293_s25  }
  0x29   : > { %s1430_s1 = sand.u32 (!%p1411_p3), 1, %s1274_s16  }
  0x2a   : > { %s1433_s19 = sshll.u32 (!%p1411_p3), %s1430_s1, 5  ;;  %s304_s5 = scalar_lea.sflag (!%p1411_p3), [#allocation6], %s1430_s1 }
  0x2b   : > { %s307_s29 = scalar_lea.vmem (!%p1411_p3), [#allocation5], %s1433_s19 }
  0x2c   : > { %1257 = dma.done.wait (%p1375_p8), %s304_s5, 512  }
  0x2d   : > { %1259 = vsyncadd (%p1375_p8), %s304_s5, 4294966784  ;;  %s313_s17 = sand.u32 1, %s1355_s21   ;;  %s317_s23 = scalar_lea.vmem [#allocation8], %s1433_s19 }
  0x2e   : > { %s314_s20 = scalar_lea.sflag [#allocation9], %s313_s17 }
  0x2f   : > { %1261 = dma.done.wait (%p1375_p8), %s314_s20, 1024  }
  0x30   : > { %1263 = vsyncadd (%p1375_p8), %s314_s20, 4294966272  ;;  %p372_p4 = scmp.lt.s32.totalorder %s1282_s18, 1  ;;  %vm392_vm0 = vcmask 261120   ;;  %v401_v0 = vld [vmem:[%s317_s23] sm:$0xff]  ;;  %v403_v1 = vld [vmem:[%s317_s23 + $0x10] sm:$0xff]  ;;  %vm383_vm1 = vcmask 7168  }
  0x31   : > { %v397_v2 = vld [vmem:[%s307_s29] sm:$0xff]  ;;  %986 = vmatpush.xpose.msk.msra.mxu0 %vm392_vm0, %v401_v0  ;;  %990 = vmatpush.xpose.msk.msra.mxu2 %vm392_vm0, %v403_v1  ;;  %v399_v4 = vld [vmem:[%s307_s29 + $0x10] sm:$0xff]  ;;  %v402_v5 = vld [vmem:[%s317_s23 + $0x8] sm:$0xff]  ;;  %v1294_v12 = vmov -inf   ;;  %vm526_vm2 = vcmask 64512   ;;  %v1295_v26 = vmov 0  }
  0x32   : > { %s1449_s30 = scalar_select %p372_p4, %s1282_s18, 1  ;;  %v410_v3 = vmul.f32 0.17677669, %v397_v2  ;;  %v404_v6 = vld [vmem:[%s317_s23 + $0x18] sm:$0xff]  ;;  %v412_v7 = vmul.f32 0.17677669, %v399_v4  ;;  %988 = vmatpush.xpose.msk.msra.mxu1 %vm392_vm0, %v402_v5  ;;  %1086 = vset.pattern.permute.xlu0 %v1295_v26 }
  0x33   : > { %992 = vmatpush.xpose.msk.msra.mxu3 %vm392_vm0, %v404_v6  ;;  %v398_v8 = vld [vmem:[%s307_s29 + $0x8] sm:$0xff]  ;;  %v400_v9 = vld [vmem:[%s307_s29 + $0x18] sm:$0xff]  ;;  %384 = vst.msk [vmem:[#allocation2] sm:$0xff] %vm383_vm1, %v1294_v12  ;;  %1088 = vset.pattern.permute.xlu2 %v1295_v26  ;;  %v1296_v27 = vmov 0.0   ;;  %s327_s7 = scalar_lea.vmem [#allocation10], %s1433_s19  ;;  %s368_s8 = scalar_lea.vmem [#allocation11], %s1433_s19 }
  0x34   : > { %s377_s6 = scalar_lea.vmem %s1558_s3, %s1449_s30  ;;  %v411_v10 = vmul.f32 0.17677669, %v398_v8  ;;  %v413_v11 = vmul.f32 0.17677669, %v400_v9  ;;  %987 = vmatmul.msk.f32.vlgmr.msra.gmra.mxu0 %vm392_vm0, %v410_v3  ;;  %991 = vmatmul.msk.f32.vlgmr.msra.gmra.mxu2 %vm392_vm0, %v412_v7  ;;  %385 = vst.msk [vmem:[#allocation2 + $0x8] sm:$0xff] %vm383_vm1, %v1294_v12  ;;  %v407_v44 = vld [vmem:[%s327_s7 + $0x10] sm:$0xff] }
  0x35   : > { %386 = vst.msk [vmem:[#allocation2 + $0x10] sm:$0xff] %vm383_vm1, %v1294_v12  ;;  %v1089_v13 = vld [vmem:[%s377_s6] ss:$0 sm:$0xff]  ;;  %1087 = vset.pattern.permute.xlu1 %v1295_v26  ;;  %680 = vmatpush.msrb.mxu2 %v407_v44  ;;  %v408_v45 = vld [vmem:[%s327_s7 + $0x18] sm:$0xff]  ;;  %v406_v47 = vld [vmem:[%s327_s7 + $0x8] sm:$0xff]  ;;  %s1006_s24 = sshll.u32 %s1282_s18, 5 }
  0x36   : > { %989 = vmatmul.msk.f32.vlgmr.msra.gmra.mxu1 %vm392_vm0, %v411_v10  ;;  %993 = vmatmul.msk.f32.vlgmr.msra.gmra.mxu3 %vm392_vm0, %v413_v11  ;;  %387 = vst.msk [vmem:[#allocation2 + $0x18] sm:$0xff] %vm383_vm1, %v1294_v12  ;;  %v405_v46 = vld [vmem:[%s327_s7] sm:$0xff]  ;;  %s806_s10 = scalar_lea.hbm %s1559_s4, %s1006_s24  ;;  %s807_s11 = sshll.u32 %s368_s8, 4  ;;  %s808_s11 = int_to_ptr.vmem [resolvable:$true] %s807_s11 }
  0x37   : > { %390 = vst.msk [vmem:[#allocation3 + $0x10] sm:$0xff] %vm383_vm1, %v1296_v27  ;;  %703 = vmatpush.msrb.mxu3 %v408_v45  ;;  %634 = vmatpush.msrb.mxu0 %v405_v46  ;;  %s809_s12 = sshll.u32 %s806_s10, 4  ;;  %s792_s14 = scalar_lea.sflag [#allocation7], %s1430_s1  ;;  %s810_s12 = int_to_ptr.hbm [resolvable:$true] %s809_s12 }
  0x38   : > { %388 = vst.msk [vmem:[#allocation3] sm:$0xff] %vm383_vm1, %v1296_v27  ;;  %657 = vmatpush.msrb.mxu1 %v406_v47  ;;  %s1218_s9 = sshra.s32 %s810_s12, 4  ;;  %s1224_s19 = scalar_lea.hbm %s1559_s4, 64  ;;  %s1219_s9 = int_to_ptr.hbm [resolvable:$true] %s1218_s9 }
  0x39   : > { %389 = vst.msk [vmem:[#allocation3 + $0x8] sm:$0xff] %vm383_vm1, %v1296_v27  ;;  %s1220_s13 = scalar_lea.hbm %s1219_s9, 32  ;;  %p1225_p8 = scmp.lt.s32.totalorder %s1219_s9, %s1559_s4 }
  0x3a   : > { %391 = vst.msk [vmem:[#allocation3 + $0x18] sm:$0xff] %vm383_vm1, %v1296_v27  ;;  %v1485_v28 = vld [vmem:[#allocation2] sm:$0xff]  ;;  %p1221_p5 = scmp.ne.s32.totalorder %s1219_s9, %s1220_s13  ;;  %p1226_p10 = scmp.lt.s32.totalorder %s1224_s19, %s1220_s13 }
  0x3b   : > { %393 = vst.msk [vmem:[#allocation4] sm:$0xff] %vm392_vm0, %v1296_v27  ;;  %v523_v34 = vld [vmem:[#allocation2 + $0x8] sm:$0xff] }
  0x3c   : > { %394 = vst.msk [vmem:[#allocation4 + $0x8] sm:$0xff] %vm392_vm0, %v1296_v27  ;;  %v524_v32 = vld [vmem:[#allocation2 + $0x10] sm:$0xff]  ;;  %p1222_p6 = pnand %p1221_p5, %p1379_p9  ;;  %p1227_p13 = por %p1226_p10, %p1225_p8 }
  0x3d   : > { %395 = vst.msk [vmem:[#allocation4 + $0x10] sm:$0xff] %vm392_vm0, %v1296_v27  ;;  %v525_v40 = vld [vmem:[#allocation2 + $0x18] sm:$0xff] }
  0x3e   : > { %396 = vst.msk [vmem:[#allocation4 + $0x18] sm:$0xff] %vm392_vm0, %v1296_v27  ;;  %v589_v11 = vld [vmem:[#allocation3 + $0x10] sm:$0xff]  ;;  %p1223_p7 = pneg %p1222_p6 }
  0x40   : > { %p1228_p0 = pnand %p1227_p13, %p1223_p7 }
  0x41   : > { %v590_v45 = vld [vmem:[#allocation3 + $0x18] sm:$0xff] }
  0xb1   : > { %v441_v14 = vpop.f32.mrf.mxu0 }
  0xb2   : > { %v1467_v15 = vadd.f32 %v1089_v13, %v441_v14 }
  0xb3   : > { %v467_v16 = vpop.f32.mrf.mxu1 }
  0xb4   : > { %v527_v17 = vsel %vm526_vm2, %v1467_v15, -inf  ;;  %v1471_v18 = vadd.f32 %v1089_v13, %v467_v16 }
  0xb5   : > { %528 = vmax.xlane.f32.xlu1 %v527_v17  ;;  %v587_v17 = vld [vmem:[#allocation3] sm:$0xff] }
  0xb6   : > { %v530_v23 = vsel %vm526_vm2, %v1471_v18, -inf }
  0xb7   : > { %v493_v19 = vpop.f32.mrf.mxu2 }
  0xb8   : > { %v494_v20 = vadd.f32 %v1089_v13, %v493_v19 }
  0xb9   : > { %v519_v21 = vpop.f32.mrf.mxu3 }
  0xba   : > { %v533_v22 = vsel %vm526_vm2, %v494_v20, -inf  ;;  %v520_v24 = vadd.f32 %v1089_v13, %v519_v21 }
  0xbb   : > { %534 = vmax.xlane.f32.xlu0 %v533_v22  ;;  %v588_v22 = vld [vmem:[#allocation3 + $0x8] sm:$0xff] }
  0xbc   : > { %v536_v25 = vsel %vm526_vm2, %v520_v24, -inf }
  0xbd   : > { %531 = vmax.xlane.f32.xlu1 %v530_v23  ;;  %v708_v23 = vld [vmem:[#allocation4] sm:$0xff] }
  0xc3   : > { %537 = vmax.xlane.f32.xlu0 %v536_v25 }
 0x128   : > { %v529_v29 = vpop.xlane.xlu1 %528 }
 0x129   : > { %v539_v30 = vmax.f32 %v1485_v28, %v529_v29 }
 0x12b   : > { %v543_v31 = vsub.f32 %v1485_v28, %v539_v30  ;;  %744 = vst.msk [vmem:[#allocation2] sm:$0xff] %vm383_vm1, %v539_v30  ;;  %557 = vperm.xlu0 %1086, %v539_v30  }
 0x12d   : > { %v547_v3 = vmul.f32 1.442695, %v543_v31 }
 0x12e   : > { %v535_v33 = vpop.xlane.xlu0 %534 }
 0x12f   : > { %v541_v35 = vmax.f32 %v524_v32, %v535_v33 }
 0x130   : > { %v532_v36 = vpop.xlane.xlu1 %531 }
 0x131   : > { %v545_v37 = vsub.f32 %v524_v32, %v541_v35  ;;  %746 = vst.msk [vmem:[#allocation2 + $0x10] sm:$0xff] %vm383_vm1, %v541_v35  ;;  %v540_v38 = vmax.f32 %v523_v34, %v532_v36  ;;  %567 = vperm.xlu2 %1088, %v541_v35   ;;  %v710_v32 = vld [vmem:[#allocation4 + $0x10] sm:$0xff] }
 0x133   : > { %v544_v39 = vsub.f32 %v523_v34, %v540_v38  ;;  %745 = vst.msk [vmem:[#allocation2 + $0x8] sm:$0xff] %vm383_vm1, %v540_v38  ;;  %562 = vperm.xlu1 %1087, %v540_v38   ;;  %v551_v4 = vmul.f32 1.442695, %v545_v37 }
 0x135   : > { %v549_v5 = vmul.f32 1.442695, %v544_v39 }
 0x136   : > { %v538_v41 = vpop.xlane.xlu0 %537 }
 0x137   : > { %v542_v42 = vmax.f32 %v525_v40, %v538_v41 }
 0x139   : > { %v546_v43 = vsub.f32 %v525_v40, %v542_v42  ;;  %747 = vst.msk [vmem:[#allocation2 + $0x18] sm:$0xff] %vm383_vm1, %v542_v42  ;;  %572 = vperm.xlu2 %1088, %v542_v42   ;;  %v709_v40 = vld [vmem:[#allocation4 + $0x8] sm:$0xff] }
 0x13b   : > { %v553_v10 = vmul.f32 1.442695, %v546_v43 }
 0x18b   : > { %v568_v48 = vpop.permute.xlu2 %567 }
 0x18c   : > { %v577_v49 = vsub.f32 %v494_v20, %v568_v48 }
 0x18e   : > { %v583_v50 = vmul.f32 1.442695, %v577_v49  ;;  %v711_v49 = vld [vmem:[#allocation4 + $0x18] sm:$0xff] }
 0x190   : > { %1090 = vpow2.f32 %v583_v50 }
 0x193   : > { %v573_v51 = vpop.permute.xlu2 %572 }
 0x194   : > { %v578_v52 = vsub.f32 %v520_v24, %v573_v51 }
 0x196   : > { %v1091_v53 = vpop.eup %1090  ;;  %v585_v54 = vmul.f32 1.442695, %v578_v52 }
 0x197   : > { %996 = vmatmul.msk.f32.vlgmr.msrb.gmra.mxu2 %vm526_vm2, %v1091_v53  ;;  %v601_v55 = vsel %vm526_vm2, %v1091_v53, 0.0 }
 0x198   : > { %1092 = vpow2.f32 %v585_v54  ;;  %602 = vadd.xlane.f32.xlu0 %v601_v55 }
 0x19d   : > { %v558_v56 = vpop.permute.xlu0 %557 }
 0x19e   : > { %v1093_v57 = vpop.eup %1092  ;;  %v575_v58 = vsub.f32 %v1467_v15, %v558_v56 }
 0x19f   : > { %997 = vmatmul.msk.f32.vlgmr.msrb.gmra.mxu3 %vm526_vm2, %v1093_v57  ;;  %v604_v9 = vsel %vm526_vm2, %v1093_v57, 0.0 }
 0x1a0   : > { %v579_v59 = vmul.f32 1.442695, %v575_v58 }
 0x1a2   : > { %1094 = vpow2.f32 %v579_v59 }
 0x1a5   : > { %v563_v60 = vpop.permute.xlu1 %562 }
 0x1a6   : > { %v576_v61 = vsub.f32 %v1471_v18, %v563_v60 }
 0x1a8   : > { %v1095_v62 = vpop.eup %1094  ;;  %v581_v63 = vmul.f32 1.442695, %v576_v61 }
 0x1a9   : > { %994 = vmatmul.msk.f32.vlgmr.msrb.gmra.mxu0 %vm526_vm2, %v1095_v62  ;;  %v595_v0 = vsel %vm526_vm2, %v1095_v62, 0.0 }
 0x1aa   : > { %1096 = vpow2.f32 %v581_v63  ;;  %596 = vadd.xlane.f32.xlu2 %v595_v0 }
 0x1ab   : > { %1098 = vpow2.f32 %v547_v3 }
 0x1ac   : > { %1100 = vpow2.f32 %v551_v4 }
 0x1ad   : > { %1102 = vpow2.f32 %v549_v5 }
 0x1ae   : > { %1104 = vpow2.f32 %v553_v10 }
 0x1b0   : > { %v1097_v1 = vpop.eup %1096 }
 0x1b1   : > { %995 = vmatmul.msk.f32.vlgmr.msrb.gmra.mxu1 %vm526_vm2, %v1097_v1  ;;  %v598_v2 = vsel %vm526_vm2, %v1097_v1, 0.0  ;;  %v1099_v6 = vpop.eup %1098 }
 0x1b2   : > { %599 = vadd.xlane.f32.xlu1 %v598_v2  ;;  %v1101_v7 = vpop.eup %1100  ;;  %v591_v19 = vmul.f32 %v1099_v6, %v587_v17 }
 0x1b3   : > { %v1103_v8 = vpop.eup %1102  ;;  %v593_v13 = vmul.f32 %v1101_v7, %v589_v11 }
 0x1b4   : > { %v1105_v12 = vpop.eup %1104  ;;  %v592_v24 = vmul.f32 %v1103_v8, %v588_v22 }
 0x1b5   : > { %v594_v46 = vmul.f32 %v1105_v12, %v590_v45 }
 0x1c2   : > { %714 = vperm.xlu2 %1088, %v1099_v6  }
 0x1ca   : > { %724 = vperm.xlu2 %1088, %v1101_v7  }
 0x1cb   : > { %719 = vperm.xlu1 %1087, %v1103_v8  }
 0x1f3   : > { %605 = vadd.xlane.f32.xlu2 %v604_v9 }
 0x20b   : > { %v603_v14 = vpop.xlane.xlu0 %602  ;;  %729 = vperm.xlu2 %1088, %v1105_v12  }
 0x20c   : > { %v609_v15 = vadd.f32 %v603_v14, %v593_v13 }
 0x20e   : > { %614 = vst.msk [vmem:[#allocation3 + $0x10] sm:$0xff] %vm383_vm1, %v609_v15 }
 0x215   : > { %v753_v16 = vld [vmem:[#allocation3 + $0x10] sm:$0xff] }
 0x216   : > { %1106 = vrcp.f32 %v753_v16 }
 0x21a   : > { %v682_v36 = vpop.f32.mrf.mxu2 }
 0x21c   : > { %v1107_v18 = vpop.eup %1106 }
 0x21d   : > { %v597_v20 = vpop.xlane.xlu2 %596  ;;  %775 = vperm.xlu1 %1087, %v1107_v18  }
 0x21e   : > { %v607_v21 = vadd.f32 %v597_v20, %v591_v19 }
 0x220   : > { %612 = vst.msk [vmem:[#allocation3] sm:$0xff] %vm383_vm1, %v607_v21 }
 0x222   : > { %v705_v52 = vpop.f32.mrf.mxu3 }
 0x225   : > { %v600_v25 = vpop.xlane.xlu1 %599  ;;  %v715_v26 = vpop.permute.xlu2 %714 }
 0x226   : > { %v608_v27 = vadd.f32 %v600_v25, %v592_v24  ;;  %v732_v28 = vmul.f32 %v715_v26, %v708_v23  ;;  %v636_v29 = vpop.f32.mrf.mxu0 }
 0x227   : > { %v751_v30 = vld [vmem:[#allocation3] sm:$0xff] }
 0x228   : > { %613 = vst.msk [vmem:[#allocation3 + $0x8] sm:$0xff] %vm383_vm1, %v608_v27  ;;  %v736_v31 = vadd.f32 %v732_v28, %v636_v29  ;;  %1108 = vrcp.f32 %v751_v30 }
 0x22a   : > { %740 = vst.msk [vmem:[#allocation4] sm:$0xff] %vm392_vm0, %v736_v31 }
 0x22d   : > { %v725_v33 = vpop.permute.xlu2 %724 }
 0x22e   : > { %v1109_v34 = vpop.eup %1108  ;;  %v734_v35 = vmul.f32 %v725_v33, %v710_v32  ;;  %v659_v43 = vpop.f32.mrf.mxu1 }
 0x22f   : > { %765 = vperm.xlu0 %1086, %v1109_v34   ;;  %v752_v37 = vld [vmem:[#allocation3 + $0x8] sm:$0xff] }
 0x230   : > { %v738_v38 = vadd.f32 %v734_v35, %v682_v36  ;;  %1110 = vrcp.f32 %v752_v37 }
 0x231   : > { %v759_v62 = vld [vmem:[#allocation4] sm:$0xff] }
 0x232   : > { %742 = vst.msk [vmem:[#allocation4 + $0x10] sm:$0xff] %vm392_vm0, %v738_v38 }
 0x236   : > { %v1111_v39 = vpop.eup %1110 }
 0x237   : > { %770 = vperm.xlu2 %1088, %v1111_v39  }
 0x239   : > { %v761_v57 = vld [vmem:[#allocation4 + $0x10] sm:$0xff] }
 0x23d   : > { %v720_v41 = vpop.permute.xlu1 %719 }
 0x23e   : > { %v733_v42 = vmul.f32 %v720_v41, %v709_v40 }
 0x240   : > { %v737_v44 = vadd.f32 %v733_v42, %v659_v43 }
 0x242   : > { %741 = vst.msk [vmem:[#allocation4 + $0x8] sm:$0xff] %vm392_vm0, %v737_v44 }
 0x249   : > { %v760_v59 = vld [vmem:[#allocation4 + $0x8] sm:$0xff] }
 0x266   : > { %v606_v47 = vpop.xlane.xlu2 %605 }
 0x267   : > { %v610_v48 = vadd.f32 %v606_v47, %v594_v46 }
 0x269   : > { %615 = vst.msk [vmem:[#allocation3 + $0x18] sm:$0xff] %vm383_vm1, %v610_v48 }
 0x26e   : > { %v730_v50 = vpop.permute.xlu2 %729 }
 0x26f   : > { %v735_v51 = vmul.f32 %v730_v50, %v711_v49 }
 0x270   : > { %v754_v53 = vld [vmem:[#allocation3 + $0x18] sm:$0xff] }
 0x271   : > { %v739_v54 = vadd.f32 %v735_v51, %v705_v52  ;;  %1112 = vrcp.f32 %v754_v53 }
 0x273   : > { %743 = vst.msk [vmem:[#allocation4 + $0x18] sm:$0xff] %vm392_vm0, %v739_v54 }
 0x277   : > { %v1113_v55 = vpop.eup %1112 }
 0x278   : > { %780 = vperm.xlu2 %1088, %v1113_v55  }
 0x27a   : > { %v762_v1 = vld [vmem:[#allocation4 + $0x18] sm:$0xff] }
 0x28f   : > { %v776_v56 = vpop.permute.xlu1 %775 }
 0x290   : > { %v785_v58 = vmul.f32 %v776_v56, %v761_v57 }
 0x291   : > { %v771_v60 = vpop.permute.xlu2 %770 }
 0x292   : > { %789 = vst.msk [vmem:[%s368_s8 + $0x10] sm:$0xff] %vm392_vm0, %v785_v58  ;;  %v784_v61 = vmul.f32 %v771_v60, %v760_v59 }
 0x294   : > { %788 = vst.msk [vmem:[%s368_s8 + $0x8] sm:$0xff] %vm392_vm0, %v784_v61 }
 0x2a1   : > { %v766_v63 = vpop.permute.xlu0 %765 }
 0x2a2   : > { %v783_v0 = vmul.f32 %v766_v63, %v759_v62 }
 0x2a4   : > { %787 = vst.msk [vmem:[%s368_s8] sm:$0xff] %vm392_vm0, %v783_v0 }
 0x2d2   : > { %v781_v2 = vpop.permute.xlu2 %780 }
 0x2d3   : > { %v786_v3 = vmul.f32 %v781_v2, %v762_v1 }
 0x2d5   : > { %790 = vst.msk [vmem:[%s368_s8 + $0x18] sm:$0xff] %vm392_vm0, %v786_v3 }
 0x2d6   : > { %1231 = shalt.err (!%p1228_p0)
}
 0x2d7   : > { %s1297_s1 = smov 128   ;;  %s1298_s17 = smov 8  }
 0x2d8   : > { %1013 = dma.vmem_to_hbm [thread:$0]  (%p1379_p9), %s808_s11, 512, %s810_s12, %s792_s14, %s1297_s1, %s1297_s1, %s1298_s17  }
 0x2d9 PF: > { %s1581_s23 = sld [smem:[#allocation17_spill]]  ;;  %s824_s30 = sand.u32 1, %s1270_s15  }
 0x2da   : > { %p1026_p1 = pnand %p971_p12, %p1386_p11  ;;  %s825_s21 = scalar_lea.sflag [#allocation7], %s824_s30 }
 0x2dc   : > { %p1027_p2 = pneg %p1026_p1 }
 0x2de   : > { %1265 = dma.done.wait (%p1027_p2), %s825_s21, 512  }
 0x2df   : > { %1267 = vsyncadd (%p1027_p2), %s825_s21, 4294966784  ;;  %s23_s20 = sadd.s32 1, %s1581_s23   ;;  %s1582_s27 = sld [smem:[#allocation15_spill]] }
 0x2e0   : > { %p20_p3 = scmp.ge.s32.totalorder %s23_s20, 4   ;;  %s1583_s17 = sld [smem:[#allocation19_spill]] }
 0x2e1   : > { %s1584_s18 = sld [smem:[#allocation16_spill]]  ;;  %s1586_s15 = smov %s1274_s16 }
 0x2e2   : > { %s1585_s19 = sld [smem:[#allocation18_spill]]  ;;  %22 = sbr.rel (!%p20_p3) target bundleno = 10 (0xa), region = 116 }
 0x2e5   : > { %s1587_s16 = smov %s1582_s27 }
 0x2e7   :  { %831 = vsyncpa [#allocation6], 1 }
 0x2e8   :  { %833 = vsyncpa [#allocation6 + $0x1], 1 }
 0x2e9   :  { %834 = vsyncpa [#allocation9], 1 }
 0x2ea   :  { %836 = vsyncpa [#allocation9 + $0x1], 1 }
 0x2eb   :  { %837 = vsyncpa [#allocation7], 1 }
 0x2ec   :  { %839 = vsyncpa [#allocation7 + $0x1], 1 }

</bundles_post_ra>
